<compile_context>
chip_gen: v5e
topology: v5e:2x2
jax: 0.10.0
libtpu: 0.0.40
codegen_flags: <defaults>
</compile_context>

<pallas_src>
import functools

import jax
import jax.numpy as jnp
from jax.experimental import pallas as pl
from jax.experimental.pallas import tpu as pltpu

_LANES = 128
_TILE_ROWS = 4096      # (4096,128) f32 = 2 MiB block; 2 inputs x 2 buffers = 8 MiB VMEM


def _cdiv(a, b):
    return -(-a // b)


def _round_up(a, b):
    return _cdiv(a, b) * b


def _double_mean_inv_sq_kernel(xl_ref, xr_ref, out_ref, *,
                               grid_n, nblk_l, nblk_r,
                               last_rows_l, last_rows_r):
    """Accumulate sum(1/x^2) for both inputs into a resident (2, 8, 128) block."""
    t = pl.program_id(0)

    @pl.when(t == 0)
    def _():
        out_ref[...] = jnp.zeros_like(out_ref)

    def inv_sq(x):
        # EUP reciprocal + one Newton refinement: rel. error ~ e^2 << 1e-5.
        z = x * x
        y = pl.reciprocal(z, approx=True)
        return y * (jnp.float32(2.0) - z * y)

    def accumulate(x_ref, slot, nblk, last_rows):
        tr, lanes = x_ref.shape
        last = nblk - 1

        def fold(contrib):
            # Pure VPU fold of (tr, 128) contributions onto the resident (8, 128) partial.
            out_ref[slot] += contrib.reshape(tr // 8, 8, lanes).sum(axis=0)

        def full_block():
            fold(inv_sq(x_ref[...].astype(jnp.float32)))

        def tail_block():
            # Only the final (row-partial) block pays for iota/compare/select.
            x = x_ref[...].astype(jnp.float32)
            row_ids = jax.lax.broadcasted_iota(jnp.int32, (tr, lanes), 0)
            mask = row_ids < last_rows
            # Mask BEFORE the reciprocal: out-of-bounds sublane padding is
            # unspecified (could be 0 -> inf/nan); x_safe is finite & nonzero.
            x_safe = jnp.where(mask, x, jnp.float32(1.0))
            fold(jnp.where(mask, inv_sq(x_safe), jnp.float32(0.0)))

        if last_rows == tr:
            # Every block of this input (incl. the last) is full-height.
            if nblk == grid_n:
                full_block()
            else:
                pl.when(t < nblk)(full_block)      # skip clamped duplicate blocks
        else:
            if last > 0:
                pl.when(t < last)(full_block)      # fast interior path
            pl.when(t == last)(tail_block)         # t > last (duplicates): no compute

    accumulate(xl_ref, 0, nblk_l, last_rows_l)
    accumulate(xr_ref, 1, nblk_r, last_rows_r)


def _as_slab(x):
    """Flatten to a lane-dense (rows, 128) slab; lane remainder padded with 1s."""
    n = int(x.size)
    flat = x.reshape(-1)
    rem = n % _LANES
    pad = (_LANES - rem) % _LANES
    if pad:
        # Each pad element contributes exactly 1/(1^2) = 1.0, subtracted as a
        # scalar after the kernel -> no per-element lane masking in-kernel.
        flat = jnp.pad(flat, (0, pad), constant_values=1)
    rows = (n + pad) // _LANES
    # Note: for trailing dims that aren't 128-aligned this reshape is one
    # relayout pass in HBM; acceptable for regularizer-sized tensors.
    return flat.reshape(rows, _LANES), n, pad, rows


@jax.jit
def double_regression_regularizer(x_left, x_right):
    slab_l, n_l, pad_l, rows_l = _as_slab(x_left)
    slab_r, n_r, pad_r, rows_r = _as_slab(x_right)

    tile_rows = min(_TILE_ROWS, _round_up(max(rows_l, rows_r), 8))
    nblk_l = _cdiv(rows_l, tile_rows)
    nblk_r = _cdiv(rows_r, tile_rows)
    grid_n = max(nblk_l, nblk_r)
    last_rows_l = rows_l - (nblk_l - 1) * tile_rows   # valid rows in last block
    last_rows_r = rows_r - (nblk_r - 1) * tile_rows

    kernel = functools.partial(
        _double_mean_inv_sq_kernel,
        grid_n=grid_n, nblk_l=nblk_l, nblk_r=nblk_r,
        last_rows_l=last_rows_l, last_rows_r=last_rows_r)

    total = (rows_l + rows_r) * _LANES
    cost = pl.CostEstimate(
        flops=5 * total,
        transcendentals=total,
        bytes_accessed=int(rows_l * _LANES * slab_l.dtype.itemsize
                           + rows_r * _LANES * slab_r.dtype.itemsize
                           + 2 * 8 * _LANES * 4))

    partials = pl.pallas_call(
        kernel,
        out_shape=jax.ShapeDtypeStruct((2, 8, _LANES), jnp.float32),
        grid_spec=pltpu.PrefetchScalarGridSpec(
            num_scalar_prefetch=0,
            grid=(grid_n,),
            in_specs=[
                pl.BlockSpec((tile_rows, _LANES),
                             lambda t: (jnp.minimum(t, nblk_l - 1), 0)),
                pl.BlockSpec((tile_rows, _LANES),
                             lambda t: (jnp.minimum(t, nblk_r - 1), 0)),
            ],
            out_specs=pl.BlockSpec((2, 8, _LANES), lambda t: (0, 0, 0)),
        ),
        compiler_params=pltpu.CompilerParams(
            dimension_semantics=("arbitrary",)),
        cost_estimate=cost,
    )(slab_l, slab_r)

    # Tiny final cross-lane reduce, pad removal, and per-input 1/n scale in JAX.
    sum_l = jnp.sum(partials[0]) - jnp.float32(pad_l)
    sum_r = jnp.sum(partials[1]) - jnp.float32(pad_r)
    return sum_l * jnp.float32(1.0 / n_l) + sum_r * jnp.float32(1.0 / n_r)


if __name__ == "__main__":
    key = jax.random.PRNGKey(0)
    k1, k2 = jax.random.split(key)
    # Small NCHW-style shapes consistent with a regression regularizer input.
    x_left = jax.random.uniform(k1, (2, 4, 16, 16), jnp.float32,
                                minval=0.5, maxval=2.0)
    x_right = jax.random.uniform(k2, (2, 4, 16, 16), jnp.float32,
                                 minval=0.5, maxval=2.0)

    result = double_regression_regularizer(x_left, x_right)
    jax.block_until_ready(result)

    # Reference check (pure JAX, mirrors torch.mean(1/x**2) semantics).
    ref = jnp.mean(1.0 / x_left ** 2) + jnp.mean(1.0 / x_right ** 2)
    assert jnp.allclose(result, ref, rtol=1e-5, atol=1e-5), (result, ref)
    print("KERNEL_OK")
</pallas_src>

<mosaic_0001>
module attributes {stable_mosaic.version = 11 : i64} {
  func.func @_double_mean_inv_sq_kernel(%arg0: i32, %arg1: memref<16x128xf32, #tpu.memory_space<vmem>>, %arg2: memref<16x128xf32, #tpu.memory_space<vmem>>, %arg3: memref<2x8x128xf32, #tpu.memory_space<vmem>>) attributes {dimension_semantics = [#tpu.dimension_semantics<arbitrary>], iteration_bounds = array<i64: 1>, scalar_prefetch = 0 : i64, scratch_operands = 0 : i64, tpu.core_type = #tpu.core_type<tc>, window_params = [{transform_indices = @transform_0, window_bounds = array<i64: 16, 128>}, {transform_indices = @transform_1, window_bounds = array<i64: 16, 128>}, {pipeline_mode = #tpu.pipeline_mode<synchronous>, transform_indices = @transform_2, window_bounds = array<i64: 2, 8, 128>}]} {
    %c0_i32 = arith.constant 0 : i32
    %0 = arith.cmpi eq, %arg0, %c0_i32 : i32
    %1 = arith.extui %0 : i1 to i32
    %c0_i32_0 = arith.constant 0 : i32
    %2 = arith.cmpi ne, %1, %c0_i32_0 : i32
    scf.if %2 {
      %cst_18 = arith.constant 0.000000e+00 : f32
      %33 = vector.broadcast %cst_18 : f32 to vector<2x8x128xf32>
      %c0_19 = arith.constant 0 : index
      %c0_20 = arith.constant 0 : index
      %c0_21 = arith.constant 0 : index
      %34 = vector.load %arg3[%c0_19, %c0_20, %c0_21] : memref<2x8x128xf32, #tpu.memory_space<vmem>>, vector<2x8x128xf32>
      tpu.vector_store %arg3[%c0_19, %c0_20, %c0_21], %33 {strides = array<i32>} : memref<2x8x128xf32, #tpu.memory_space<vmem>>, vector<2x8x128xf32>,
    } else {
    }
    %c0 = arith.constant 0 : index
    %c0_1 = arith.constant 0 : index
    %3 = vector.load %arg1[%c0, %c0_1] : memref<16x128xf32, #tpu.memory_space<vmem>>, vector<16x128xf32>
    %4 = arith.mulf %3, %3 : vector<16x128xf32>
    %5 = tpu.reciprocal %4 {approx = true} : vector<16x128xf32> -> vector<16x128xf32>
    %6 = arith.mulf %4, %5 : vector<16x128xf32>
    %cst = arith.constant 2.000000e+00 : f32
    %7 = vector.broadcast %cst : f32 to vector<16x128xf32>
    %8 = arith.subf %7, %6 : vector<16x128xf32>
    %9 = arith.mulf %5, %8 : vector<16x128xf32>
    %c0_2 = arith.constant 0 : index
    %c0_3 = arith.constant 0 : index
    %c0_4 = arith.constant 0 : index
    %10 = vector.load %arg3[%c0_2, %c0_3, %c0_4] : memref<2x8x128xf32, #tpu.memory_space<vmem>>, vector<1x8x128xf32>
    %11 = vector.shape_cast %10 : vector<1x8x128xf32> to vector<8x128xf32>
    %12 = vector.shape_cast %9 : vector<16x128xf32> to vector<2x8x128xf32>
    %cst_5 = arith.constant dense<0.000000e+00> : vector<8x128xf32>
    %13 = vector.multi_reduction <add>, %12, %cst_5 [0] : vector<2x8x128xf32> to vector<8x128xf32>
    %14 = arith.addf %11, %13 : vector<8x128xf32>
    %c0_6 = arith.constant 0 : index
    %c0_7 = arith.constant 0 : index
    %c0_8 = arith.constant 0 : index
    %15 = vector.load %arg3[%c0_6, %c0_7, %c0_8] : memref<2x8x128xf32, #tpu.memory_space<vmem>>, vector<1x8x128xf32>
    %16 = vector.shape_cast %15 : vector<1x8x128xf32> to vector<8x128xf32>
    %17 = vector.shape_cast %14 : vector<8x128xf32> to vector<1x8x128xf32>
    tpu.vector_store %arg3[%c0_6, %c0_7, %c0_8], %17 {strides = array<i32>} : memref<2x8x128xf32, #tpu.memory_space<vmem>>, vector<1x8x128xf32>,
    %c0_9 = arith.constant 0 : index
    %c0_10 = arith.constant 0 : index
    %18 = vector.load %arg2[%c0_9, %c0_10] : memref<16x128xf32, #tpu.memory_space<vmem>>, vector<16x128xf32>
    %19 = arith.mulf %18, %18 : vector<16x128xf32>
    %20 = tpu.reciprocal %19 {approx = true} : vector<16x128xf32> -> vector<16x128xf32>
    %21 = arith.mulf %19, %20 : vector<16x128xf32>
    %cst_11 = arith.constant 2.000000e+00 : f32
    %22 = vector.broadcast %cst_11 : f32 to vector<16x128xf32>
    %23 = arith.subf %22, %21 : vector<16x128xf32>
    %24 = arith.mulf %20, %23 : vector<16x128xf32>
    %c1 = arith.constant 1 : index
    %c0_12 = arith.constant 0 : index
    %c0_13 = arith.constant 0 : index
    %25 = vector.load %arg3[%c1, %c0_12, %c0_13] : memref<2x8x128xf32, #tpu.memory_space<vmem>>, vector<1x8x128xf32>
    %26 = vector.shape_cast %25 : vector<1x8x128xf32> to vector<8x128xf32>
    %27 = vector.shape_cast %24 : vector<16x128xf32> to vector<2x8x128xf32>
    %cst_14 = arith.constant dense<0.000000e+00> : vector<8x128xf32>
    %28 = vector.multi_reduction <add>, %27, %cst_14 [0] : vector<2x8x128xf32> to vector<8x128xf32>
    %29 = arith.addf %26, %28 : vector<8x128xf32>
    %c1_15 = arith.constant 1 : index
    %c0_16 = arith.constant 0 : index
    %c0_17 = arith.constant 0 : index
    %30 = vector.load %arg3[%c1_15, %c0_16, %c0_17] : memref<2x8x128xf32, #tpu.memory_space<vmem>>, vector<1x8x128xf32>
    %31 = vector.shape_cast %30 : vector<1x8x128xf32> to vector<8x128xf32>
    %32 = vector.shape_cast %29 : vector<8x128xf32> to vector<1x8x128xf32>
    tpu.vector_store %arg3[%c1_15, %c0_16, %c0_17], %32 {strides = array<i32>} : memref<2x8x128xf32, #tpu.memory_space<vmem>>, vector<1x8x128xf32>,
    return
  }
  func.func @transform_0(%arg0: i32) -> (i32, i32) {
    %c0_i32 = arith.constant 0 : i32
    %0 = arith.minsi %arg0, %c0_i32 : i32
    %c0_i32_0 = arith.constant 0 : i32
    %c0_i32_1 = arith.constant 0 : i32
    return %0, %c0_i32_0 : i32, i32
  }
  func.func @transform_1(%arg0: i32) -> (i32, i32) {
    %c0_i32 = arith.constant 0 : i32
    %0 = arith.minsi %arg0, %c0_i32 : i32
    %c0_i32_0 = arith.constant 0 : i32
    %c0_i32_1 = arith.constant 0 : i32
    return %0, %c0_i32_0 : i32, i32
  }
  func.func @transform_2(%arg0: i32) -> (i32, i32, i32) {
    %c0_i32 = arith.constant 0 : i32
    %c0_i32_0 = arith.constant 0 : i32
    %c0_i32_1 = arith.constant 0 : i32
    %c0_i32_2 = arith.constant 0 : i32
    return %c0_i32, %c0_i32_0, %c0_i32_1 : i32, i32, i32
  }
}

</mosaic_0001>

<bundles_post_ra>
// kernel: double_regression_regularizer.1
= control target key start
LH: loop header
LB: loop body
LE: loop exit
PB: predicated region body
PF: predicated region fallthrough
CT: control target
= control target key end

     0   :  { %s98_s0 = inlined_call_operand.vmem [shape: f32[16,128], index: 0, kind: input, shape index: {}]   ;;  %s99_s1 = inlined_call_operand.vmem [shape: f32[16,128], index: 1, kind: input, shape index: {}]   ;;  %s100_s2 = inlined_call_operand.vmem [shape: f32[2,8,128], index: 2, kind: output, shape index: {}]  }
   0x1   :  { %v17_v0 = vld [vmem:[%s98_s0] sm:$0xff]  ;;  %v18_v1 = vld [vmem:[%s98_s0 + $0x8] sm:$0xff] }
   0x2   :  { %v33_v2 = vld [vmem:[%s99_s1] sm:$0xff]  ;;  %v19_v3 = vmul.f32 %v17_v0, %v17_v0  ;;  %v20_v4 = vmul.f32 %v18_v1, %v18_v1  ;;  %v34_v5 = vld [vmem:[%s99_s1 + $0x8] sm:$0xff] }
   0x3   :  { %v35_v6 = vmul.f32 %v33_v2, %v33_v2  ;;  %v36_v7 = vmul.f32 %v34_v5, %v34_v5 }
   0x4   :  { %57 = vrcp.f32 %v19_v3 }
   0x5   :  { %59 = vrcp.f32 %v20_v4 }
   0x6   :  { %61 = vrcp.f32 %v35_v6 }
   0x7   :  { %63 = vrcp.f32 %v36_v7 }
   0xa   :  { %v58_v8 = vpop.eup %57 }
   0xb   :  { %v60_v9 = vpop.eup %59  ;;  %v23_v10 = vmul.f32 %v58_v8, %v19_v3 }
   0xc   :  { %v62_v11 = vpop.eup %61  ;;  %v24_v12 = vmul.f32 %v60_v9, %v20_v4 }
   0xd   :  { %v64_v13 = vpop.eup %63  ;;  %v25_v14 = vsub.f32 2.0, %v23_v10  ;;  %v39_v15 = vmul.f32 %v62_v11, %v35_v6 }
   0xe   :  { %v26_v16 = vsub.f32 2.0, %v24_v12  ;;  %v40_v17 = vmul.f32 %v64_v13, %v36_v7 }
   0xf   :  { %v27_v18 = vmul.f32 %v58_v8, %v25_v14  ;;  %v41_v19 = vsub.f32 2.0, %v39_v15 }
  0x10   :  { %v28_v20 = vmul.f32 %v60_v9, %v26_v16  ;;  %v42_v21 = vsub.f32 2.0, %v40_v17 }
  0x11   :  { %v43_v22 = vmul.f32 %v62_v11, %v41_v19 }
  0x12   :  { %v30_v23 = vadd.f32 %v28_v20, %v27_v18  ;;  %v44_v24 = vmul.f32 %v64_v13, %v42_v21 }
  0x14   :  { %v47_v25 = vadd.f32 %v44_v24, %v43_v22  ;;  %32 = vst [vmem:[%s100_s2] sm:$0xff] %v30_v23 }
  0x16   :  { %55 = vst [vmem:[%s100_s2 + $0x8] sm:$0xff] %v47_v25 }

</bundles_post_ra>
